<compile_context>
chip_gen: v7x
topology: tpu7x:2x2x1
jax: 0.10.0
libtpu: 0.0.40
codegen_flags: <defaults>
</compile_context>

<pallas_src>
import functools

import jax
import jax.numpy as jnp
import numpy as np
from jax.experimental import pallas as pl
from jax.experimental.pallas import tpu as pltpu


def bottleneck_kernel(x_ref, mask_ref, w1_ref, b1_ref, w2_ref, b2_ref,
                      w3_ref, b3_ref, out_ref, *, H, W, P, Cin, Cout):
    """One batch element per grid step.  (C, H*W)-major layout.

    x_ref:    (1, Cin, HW)   f32 input (also the residual)
    mask_ref: (9*P, HW)      f32 border masks (1.0 inside, 0.0 where a tap falls off-image)
    w1_ref:   (P, Cin)       bf16, conv1 1x1 weight with BN1 scale folded in
    b1_ref:   (P, 1)         f32 folded BN1 bias
    w2_ref:   (P, 9*P)       bf16, conv2 3x3 weight (taps folded into K) with BN2 scale
    b2_ref:   (P, 1)         f32 folded BN2 bias
    w3_ref:   (Cout, P)      bf16, conv3 1x1 weight with BN3 scale folded in
    b3_ref:   (Cout, 1)      f32 folded BN3 bias
    out_ref:  (1, Cout, HW)  f32
    """
    HW = H * W
    x = x_ref[0]                                            # (Cin, HW) f32

    # ---- conv1 (1x1) + bn1 + relu : one bf16 MXU matmul, lane dim = HW ----
    y1 = jnp.dot(w1_ref[...], x.astype(jnp.bfloat16),
                 preferred_element_type=jnp.float32)        # (P, HW)
    y1 = jnp.maximum(y1 + b1_ref[...], 0.0)

    # ---- conv2 (3x3, pad 1): 9 taps via XLU roll, folded into one matmul (K = 9*P) ----
    taps = []
    for dy in (-1, 0, 1):
        for dx in (-1, 0, 1):
            off = dy * W + dx                               # flat-index offset of this tap
            if off == 0:
                taps.append(y1)
            else:
                # shifted[:, i] = y1[:, (i + off) mod HW]; wrap-around is zeroed by mask.
                taps.append(pltpu.roll(y1, shift=(-off) % HW, axis=1))
    stacked = jnp.concatenate(taps, axis=0)                 # (9*P, HW) f32
    stacked = (stacked * mask_ref[...]).astype(jnp.bfloat16)
    y2 = jnp.dot(w2_ref[...], stacked,
                 preferred_element_type=jnp.float32)        # (P, HW)
    y2 = jnp.maximum(y2 + b2_ref[...], 0.0)

    # ---- conv3 (1x1) + bn3 + residual + relu ----
    y3 = jnp.dot(w3_ref[...], y2.astype(jnp.bfloat16),
                 preferred_element_type=jnp.float32)        # (Cout, HW)
    out = jnp.maximum(y3 + b3_ref[...] + x, 0.0)
    out_ref[0] = out.astype(out_ref.dtype)


def bottleneck_forward(x_nchw, w1_oihw, bn1, w2_oihw, bn2, w3_oihw, bn3, eps=1e-5):
    """NCHW in / NCHW out, matching the PyTorch module (downsample=None, stride=1)."""
    N, Cin, H, W = x_nchw.shape
    P = w1_oihw.shape[0]
    Cout = w3_oihw.shape[0]
    assert Cin == Cout, "residual add requires inplanes == planes*expansion when downsample is None"
    HW = H * W

    # ---- fold BatchNorm (inference form) into per-channel scale/bias ----
    def fold(bn):
        gamma, beta, mean, var = bn
        scale = gamma / jnp.sqrt(var + eps)
        bias = beta - mean * scale
        return scale.astype(jnp.float32), bias.astype(jnp.float32)

    s1, b1 = fold(bn1)
    s2, b2 = fold(bn2)
    s3, b3 = fold(bn3)

    # ---- fold BN scales into conv weights; bf16 matmul operands ----
    w1f = (w1_oihw[:, :, 0, 0] * s1[:, None]).astype(jnp.bfloat16)              # (P, Cin)
    w2s = w2_oihw * s2[:, None, None, None]                                     # (P, P, 3, 3)
    # columns ordered (ky, kx, cin) -> matches tap order (dy outer, dx inner) in the kernel
    w2f = jnp.transpose(w2s, (0, 2, 3, 1)).reshape(P, 9 * P).astype(jnp.bfloat16)
    w3f = (w3_oihw[:, :, 0, 0] * s3[:, None]).astype(jnp.bfloat16)              # (Cout, P)

    b1 = b1.reshape(P, 1)
    b2 = b2.reshape(P, 1)
    b3 = b3.reshape(Cout, 1)

    # ---- precomputed border masks for the 9 conv2 taps (replaces zero padding) ----
    hh, ww = np.meshgrid(np.arange(H), np.arange(W), indexing="ij")
    hh = hh.reshape(-1)
    ww = ww.reshape(-1)
    mask_rows = []
    for dy in (-1, 0, 1):
        for dx in (-1, 0, 1):
            valid = ((hh + dy >= 0) & (hh + dy < H) &
                     (ww + dx >= 0) & (ww + dx < W)).astype(np.float32)         # (HW,)
            mask_rows.append(np.repeat(valid[None, :], P, axis=0))              # (P, HW)
    mask_full = jnp.asarray(np.concatenate(mask_rows, axis=0))                  # (9*P, HW)

    # (C, HW)-major input; no wrapper-side spatial pad, no layout transpose needed.
    x2 = x_nchw.reshape(N, Cin, HW).astype(jnp.float32)

    kernel = functools.partial(bottleneck_kernel, H=H, W=W, P=P, Cin=Cin, Cout=Cout)

    out = pl.pallas_call(
        kernel,
        out_shape=jax.ShapeDtypeStruct((N, Cout, HW), jnp.float32),
        grid_spec=pltpu.PrefetchScalarGridSpec(
            num_scalar_prefetch=0,
            grid=(N,),
            in_specs=[
                pl.BlockSpec((1, Cin, HW), lambda n: (n, 0, 0)),
                pl.BlockSpec((9 * P, HW), lambda n: (0, 0)),
                pl.BlockSpec((P, Cin), lambda n: (0, 0)),
                pl.BlockSpec((P, 1), lambda n: (0, 0)),
                pl.BlockSpec((P, 9 * P), lambda n: (0, 0)),
                pl.BlockSpec((P, 1), lambda n: (0, 0)),
                pl.BlockSpec((Cout, P), lambda n: (0, 0)),
                pl.BlockSpec((Cout, 1), lambda n: (0, 0)),
            ],
            out_specs=pl.BlockSpec((1, Cout, HW), lambda n: (n, 0, 0)),
        ),
        compiler_params=pltpu.CompilerParams(dimension_semantics=("parallel",)),
    )(x2, mask_full, w1f, b1, w2f, b2, w3f, b3)

    return out.reshape(N, Cout, H, W)


def reference_forward(x, w1, bn1, w2, bn2, w3, bn3, eps=1e-5):
    """Pure-JAX f32 reference (lax conv) for the correctness check."""
    def conv(x, w, pad):
        dn = jax.lax.conv_dimension_numbers(x.shape, w.shape, ('NCHW', 'OIHW', 'NCHW'))
        return jax.lax.conv_general_dilated(x, w, (1, 1), ((pad, pad), (pad, pad)),
                                            dimension_numbers=dn)

    def bn(x, p):
        gamma, beta, mean, var = p
        sc = (gamma / jnp.sqrt(var + eps)).reshape(1, -1, 1, 1)
        bi = (beta - mean * gamma / jnp.sqrt(var + eps)).reshape(1, -1, 1, 1)
        return x * sc + bi

    out = jax.nn.relu(bn(conv(x, w1, 0), bn1))
    out = jax.nn.relu(bn(conv(out, w2, 1), bn2))
    out = bn(conv(out, w3, 0), bn3)
    return jax.nn.relu(out + x)


if __name__ == "__main__":
    key = jax.random.PRNGKey(0)
    ks = jax.random.split(key, 16)

    N, planes, H, W = 2, 4, 16, 16
    inplanes = planes * 4          # Bottleneck.expansion = 4 (required when downsample is None)

    x = jax.random.normal(ks[0], (N, inplanes, H, W), jnp.float32)

    # conv weights (PyTorch OIHW), deterministic init
    w1 = jax.random.normal(ks[1], (planes, inplanes, 1, 1), jnp.float32) * 0.15
    w2 = jax.random.normal(ks[2], (planes, planes, 3, 3), jnp.float32) * 0.15
    w3 = jax.random.normal(ks[3], (inplanes, planes, 1, 1), jnp.float32) * 0.15

    # BatchNorm params (inference mode): gamma, beta, running_mean, running_var
    def mk_bn(kg, kb, km, kv, C):
        return (jax.random.normal(kg, (C,), jnp.float32) * 0.1 + 1.0,
                jax.random.normal(kb, (C,), jnp.float32) * 0.1,
                jax.random.normal(km, (C,), jnp.float32) * 0.1,
                jnp.abs(jax.random.normal(kv, (C,), jnp.float32)) * 0.1 + 0.9)

    bn1 = mk_bn(ks[4], ks[5], ks[6], ks[7], planes)
    bn2 = mk_bn(ks[8], ks[9], ks[10], ks[11], planes)
    bn3 = mk_bn(ks[12], ks[13], ks[14], ks[15], inplanes)

    out = jax.block_until_ready(bottleneck_forward(x, w1, bn1, w2, bn2, w3, bn3))
    ref = jax.block_until_ready(reference_forward(x, w1, bn1, w2, bn2, w3, bn3))

    # bf16 matmul operands with f32 accumulation -> slightly looser tolerance than pure f32.
    np.testing.assert_allclose(np.asarray(out), np.asarray(ref), rtol=3e-2, atol=3e-2)

    # TODO(synk): the ccnorm/compose/decompose FFT downsample branch only runs when a
    # downsample module is supplied; it is dead code for downsample=None and not implemented.
    print("KERNEL_OK")
</pallas_src>

<mosaic_0001>
module attributes {stable_mosaic.version = 11 : i64} {
  func.func @bottleneck_kernel(%arg0: i32, %arg1: memref<1x16x256xf32, #tpu.memory_space<vmem>>, %arg2: memref<36x256xf32, #tpu.memory_space<vmem>>, %arg3: memref<4x16xbf16, #tpu.memory_space<vmem>>, %arg4: memref<4x1xf32, #tpu.memory_space<vmem>>, %arg5: memref<4x36xbf16, #tpu.memory_space<vmem>>, %arg6: memref<4x1xf32, #tpu.memory_space<vmem>>, %arg7: memref<16x4xbf16, #tpu.memory_space<vmem>>, %arg8: memref<16x1xf32, #tpu.memory_space<vmem>>, %arg9: memref<1x16x256xf32, #tpu.memory_space<vmem>>) attributes {dimension_semantics = [#tpu.dimension_semantics<parallel>], iteration_bounds = array<i64: 2>, scalar_prefetch = 0 : i64, scratch_operands = 0 : i64, tpu.core_type = #tpu.core_type<tc>, window_params = [{transform_indices = @transform_0, window_bounds = array<i64: 1, 16, 256>}, {pipeline_mode = #tpu.pipeline_mode<synchronous>, transform_indices = @transform_1, window_bounds = array<i64: 36, 256>}, {pipeline_mode = #tpu.pipeline_mode<synchronous>, transform_indices = @transform_2, window_bounds = array<i64: 4, 16>}, {pipeline_mode = #tpu.pipeline_mode<synchronous>, transform_indices = @transform_3, window_bounds = array<i64: 4, 1>}, {pipeline_mode = #tpu.pipeline_mode<synchronous>, transform_indices = @transform_4, window_bounds = array<i64: 4, 36>}, {pipeline_mode = #tpu.pipeline_mode<synchronous>, transform_indices = @transform_5, window_bounds = array<i64: 4, 1>}, {pipeline_mode = #tpu.pipeline_mode<synchronous>, transform_indices = @transform_6, window_bounds = array<i64: 16, 4>}, {pipeline_mode = #tpu.pipeline_mode<synchronous>, transform_indices = @transform_7, window_bounds = array<i64: 16, 1>}, {transform_indices = @transform_8, window_bounds = array<i64: 1, 16, 256>}]} {
    %c0 = arith.constant 0 : index
    %c0_0 = arith.constant 0 : index
    %c0_1 = arith.constant 0 : index
    %0 = vector.load %arg1[%c0, %c0_0, %c0_1] : memref<1x16x256xf32, #tpu.memory_space<vmem>>, vector<1x16x256xf32>
    %1 = vector.shape_cast %0 : vector<1x16x256xf32> to vector<16x256xf32>
    %c0_2 = arith.constant 0 : index
    %c0_3 = arith.constant 0 : index
    %2 = vector.load %arg3[%c0_2, %c0_3] : memref<4x16xbf16, #tpu.memory_space<vmem>>, vector<4x16xbf16>
    %3 = arith.truncf %1 : vector<16x256xf32> to vector<16x256xbf16>
    %cst = arith.constant dense<0.000000e+00> : vector<4x256xf32>
    %4 = tpu.matmul %2, %3, %cst {dimension_numbers = #tpu.dot_dimension_numbers<[1], [0], [0], [1], [0, 0, 1, 1], [], []>} : vector<4x16xbf16>, vector<16x256xbf16>, vector<4x256xf32> -> vector<4x256xf32>
    %c0_4 = arith.constant 0 : index
    %c0_5 = arith.constant 0 : index
    %5 = vector.load %arg4[%c0_4, %c0_5] : memref<4x1xf32, #tpu.memory_space<vmem>>, vector<4x1xf32>
    %6 = vector.broadcast %5 : vector<4x1xf32> to vector<4x256xf32>
    %7 = arith.addf %4, %6 : vector<4x256xf32>
    %cst_6 = arith.constant 0.000000e+00 : f32
    %8 = vector.broadcast %cst_6 : f32 to vector<4x256xf32>
    %9 = arith.maximumf %7, %8 : vector<4x256xf32>
    %c17_i32 = arith.constant 17 : i32
    %10 = tpu.dynamic_rotate %9 by %c17_i32 dim 1 : vector<4x256xf32>, i32 -> vector<4x256xf32>
    %c16_i32 = arith.constant 16 : i32
    %11 = tpu.dynamic_rotate %9 by %c16_i32 dim 1 : vector<4x256xf32>, i32 -> vector<4x256xf32>
    %c15_i32 = arith.constant 15 : i32
    %12 = tpu.dynamic_rotate %9 by %c15_i32 dim 1 : vector<4x256xf32>, i32 -> vector<4x256xf32>
    %c1_i32 = arith.constant 1 : i32
    %13 = tpu.dynamic_rotate %9 by %c1_i32 dim 1 : vector<4x256xf32>, i32 -> vector<4x256xf32>
    %c255_i32 = arith.constant 255 : i32
    %14 = tpu.dynamic_rotate %9 by %c255_i32 dim 1 : vector<4x256xf32>, i32 -> vector<4x256xf32>
    %c241_i32 = arith.constant 241 : i32
    %15 = tpu.dynamic_rotate %9 by %c241_i32 dim 1 : vector<4x256xf32>, i32 -> vector<4x256xf32>
    %c240_i32 = arith.constant 240 : i32
    %16 = tpu.dynamic_rotate %9 by %c240_i32 dim 1 : vector<4x256xf32>, i32 -> vector<4x256xf32>
    %c239_i32 = arith.constant 239 : i32
    %17 = tpu.dynamic_rotate %9 by %c239_i32 dim 1 : vector<4x256xf32>, i32 -> vector<4x256xf32>
    %18 = tpu.concatenate %10, %11, %12, %13, %9, %14, %15, %16, %17 in 0 : vector<4x256xf32>, vector<4x256xf32>, vector<4x256xf32>, vector<4x256xf32>, vector<4x256xf32>, vector<4x256xf32>, vector<4x256xf32>, vector<4x256xf32>, vector<4x256xf32> -> vector<36x256xf32>
    %c0_7 = arith.constant 0 : index
    %c0_8 = arith.constant 0 : index
    %19 = vector.load %arg2[%c0_7, %c0_8] : memref<36x256xf32, #tpu.memory_space<vmem>>, vector<36x256xf32>
    %20 = arith.mulf %18, %19 : vector<36x256xf32>
    %21 = arith.truncf %20 : vector<36x256xf32> to vector<36x256xbf16>
    %c0_9 = arith.constant 0 : index
    %c0_10 = arith.constant 0 : index
    %22 = vector.load %arg5[%c0_9, %c0_10] : memref<4x36xbf16, #tpu.memory_space<vmem>>, vector<4x36xbf16>
    %cst_11 = arith.constant dense<0.000000e+00> : vector<4x256xf32>
    %23 = tpu.matmul %22, %21, %cst_11 {dimension_numbers = #tpu.dot_dimension_numbers<[1], [0], [0], [1], [0, 0, 1, 1], [], []>} : vector<4x36xbf16>, vector<36x256xbf16>, vector<4x256xf32> -> vector<4x256xf32>
    %c0_12 = arith.constant 0 : index
    %c0_13 = arith.constant 0 : index
    %24 = vector.load %arg6[%c0_12, %c0_13] : memref<4x1xf32, #tpu.memory_space<vmem>>, vector<4x1xf32>
    %25 = vector.broadcast %24 : vector<4x1xf32> to vector<4x256xf32>
    %26 = arith.addf %23, %25 : vector<4x256xf32>
    %cst_14 = arith.constant 0.000000e+00 : f32
    %27 = vector.broadcast %cst_14 : f32 to vector<4x256xf32>
    %28 = arith.maximumf %26, %27 : vector<4x256xf32>
    %c0_15 = arith.constant 0 : index
    %c0_16 = arith.constant 0 : index
    %29 = vector.load %arg7[%c0_15, %c0_16] : memref<16x4xbf16, #tpu.memory_space<vmem>>, vector<16x4xbf16>
    %30 = arith.truncf %28 : vector<4x256xf32> to vector<4x256xbf16>
    %cst_17 = arith.constant dense<0.000000e+00> : vector<16x256xf32>
    %31 = tpu.matmul %29, %30, %cst_17 {dimension_numbers = #tpu.dot_dimension_numbers<[1], [0], [0], [1], [0, 0, 1, 1], [], []>} : vector<16x4xbf16>, vector<4x256xbf16>, vector<16x256xf32> -> vector<16x256xf32>
    %c0_18 = arith.constant 0 : index
    %c0_19 = arith.constant 0 : index
    %32 = vector.load %arg8[%c0_18, %c0_19] : memref<16x1xf32, #tpu.memory_space<vmem>>, vector<16x1xf32>
    %33 = vector.broadcast %32 : vector<16x1xf32> to vector<16x256xf32>
    %34 = arith.addf %31, %33 : vector<16x256xf32>
    %35 = arith.addf %34, %1 : vector<16x256xf32>
    %cst_20 = arith.constant 0.000000e+00 : f32
    %36 = vector.broadcast %cst_20 : f32 to vector<16x256xf32>
    %37 = arith.maximumf %35, %36 : vector<16x256xf32>
    %c0_21 = arith.constant 0 : index
    %c0_22 = arith.constant 0 : index
    %c0_23 = arith.constant 0 : index
    %38 = vector.load %arg9[%c0_21, %c0_22, %c0_23] : memref<1x16x256xf32, #tpu.memory_space<vmem>>, vector<1x16x256xf32>
    %39 = vector.shape_cast %38 : vector<1x16x256xf32> to vector<16x256xf32>
    %40 = vector.shape_cast %37 : vector<16x256xf32> to vector<1x16x256xf32>
    tpu.vector_store %arg9[%c0_21, %c0_22, %c0_23], %40 {strides = array<i32>} : memref<1x16x256xf32, #tpu.memory_space<vmem>>, vector<1x16x256xf32>,
    return
  }
  func.func @transform_0(%arg0: i32) -> (i32, i32, i32) {
    %c0_i32 = arith.constant 0 : i32
    %c0_i32_0 = arith.constant 0 : i32
    %c0_i32_1 = arith.constant 0 : i32
    return %arg0, %c0_i32, %c0_i32_0 : i32, i32, i32
  }
  func.func @transform_1(%arg0: i32) -> (i32, i32) {
    %c0_i32 = arith.constant 0 : i32
    %c0_i32_0 = arith.constant 0 : i32
    %c0_i32_1 = arith.constant 0 : i32
    return %c0_i32, %c0_i32_0 : i32, i32
  }
  func.func @transform_2(%arg0: i32) -> (i32, i32) {
    %c0_i32 = arith.constant 0 : i32
    %c0_i32_0 = arith.constant 0 : i32
    %c0_i32_1 = arith.constant 0 : i32
    return %c0_i32, %c0_i32_0 : i32, i32
  }
  func.func @transform_3(%arg0: i32) -> (i32, i32) {
    %c0_i32 = arith.constant 0 : i32
    %c0_i32_0 = arith.constant 0 : i32
    %c0_i32_1 = arith.constant 0 : i32
    return %c0_i32, %c0_i32_0 : i32, i32
  }
  func.func @transform_4(%arg0: i32) -> (i32, i32) {
    %c0_i32 = arith.constant 0 : i32
    %c0_i32_0 = arith.constant 0 : i32
    %c0_i32_1 = arith.constant 0 : i32
    return %c0_i32, %c0_i32_0 : i32, i32
  }
  func.func @transform_5(%arg0: i32) -> (i32, i32) {
    %c0_i32 = arith.constant 0 : i32
    %c0_i32_0 = arith.constant 0 : i32
    %c0_i32_1 = arith.constant 0 : i32
    return %c0_i32, %c0_i32_0 : i32, i32
  }
  func.func @transform_6(%arg0: i32) -> (i32, i32) {
    %c0_i32 = arith.constant 0 : i32
    %c0_i32_0 = arith.constant 0 : i32
    %c0_i32_1 = arith.constant 0 : i32
    return %c0_i32, %c0_i32_0 : i32, i32
  }
  func.func @transform_7(%arg0: i32) -> (i32, i32) {
    %c0_i32 = arith.constant 0 : i32
    %c0_i32_0 = arith.constant 0 : i32
    %c0_i32_1 = arith.constant 0 : i32
    return %c0_i32, %c0_i32_0 : i32, i32
  }
  func.func @transform_8(%arg0: i32) -> (i32, i32, i32) {
    %c0_i32 = arith.constant 0 : i32
    %c0_i32_0 = arith.constant 0 : i32
    %c0_i32_1 = arith.constant 0 : i32
    return %arg0, %c0_i32, %c0_i32_0 : i32, i32, i32
  }
}

</mosaic_0001>

<bundles_post_ra>
// kernel: tpu_custom_call.1
= control target key start
LH: loop header
LB: loop body
LE: loop exit
PB: predicated region body
PF: predicated region fallthrough
CT: control target
= control target key end

     0   :  { %13 = vsyncpa [#allocation3], 0  ;;  %s1346_s0 = inlined_call_operand.hbm [shape: f32[2,16,256], index: 0, kind: input, shape index: {}]   ;;  %s1347_s1 = inlined_call_operand.hbm [shape: f32[36,256], index: 1, kind: input, shape index: {}]   ;;  %s1348_s2 = inlined_call_operand.vmem [shape: bf16[4,16], index: 2, kind: input, shape index: {}]   ;;  %s1349_s3 = inlined_call_operand.vmem [shape: f32[4,1], index: 3, kind: input, shape index: {}]   ;;  %s1350_s4 = inlined_call_operand.vmem [shape: bf16[4,36], index: 4, kind: input, shape index: {}]   ;;  %s1351_s5 = inlined_call_operand.vmem [shape: f32[4,1], index: 5, kind: input, shape index: {}]   ;;  %s1352_s6 = inlined_call_operand.vmem [shape: bf16[16,4], index: 6, kind: input, shape index: {}]   ;;  %s1353_s7 = inlined_call_operand.vmem [shape: f32[16,1], index: 7, kind: input, shape index: {}]   ;;  %s1354_s8 = inlined_call_operand.hbm [shape: f32[2,16,256], index: 8, kind: output, shape index: {}]  }
   0x1   :  { %15 = vsyncpa [#allocation3 + $0x1], 0 }
   0x2   :  { %16 = vsyncpa [#allocation6], 0 }
   0x3   :  { %17 = vsyncpa [#allocation4], 0 }
   0x4   :  { %19 = vsyncpa [#allocation4 + $0x1], 0  ;;  %s1047_s27 = smov 0   ;;  %s1049_s28 = smov 0  }
   0x5   :  { %s1051_s29 = smov 0   ;;  %s1053_s30 = smov 0  }
   0x6 LB: > { %s1068_s9 = sadd.s32 4294967295, %s985_s30   ;;  %s761_s10 = sadd.s32 4294967294, %s985_s30   ;;  %s985_s30 = sphi %s1053_s30, %s1376_s30   ;;  %s981_s29 = sphi %s1051_s29, %s1379_s29   ;;  %s977_s28 = sphi %s1049_s28, %s1378_s28   ;;  %s973_s27 = sphi %s1047_s27, %s1377_s27  }
   0x7   : > { %p45_p0 = scmp.ne.s32.totalorder %s977_s28, %s973_s27  ;;  %p1355_p1 = scmp.eq.s32.totalorder %s1068_s9, 0 }
   0x8   : > { %p222_p3 = scmp.eq.s32.totalorder %s761_s10, 1  ;;  %p762_p5 = scmp.ge.s32.totalorder %s985_s30, 1 }
   0x9   : > { %p1077_p4 = por %p1355_p1, %p45_p0  ;;  %p229_p7 = scmp.lt.s32.totalorder %s985_s30, 3 }
   0xa   : > { %p1082_p6 = por %p222_p3, %p45_p0  ;;  %s987_s14 = smov [#allocation5]  }
   0xb   : > { %s1361_s11 = scalar_select %p1077_p4, 1, 0 }
   0xc   : > { %s1362_s12 = scalar_select %p1082_p6, 1, 0 }
   0xd   : > { %p1087_p8 = pnand %p762_p5, %p229_p7  ;;  %s241_s15 = sshll.u32 %s987_s14, 4  ;;  %s1091_s15 = int_to_ptr.vmem [resolvable:$true] %s241_s15 }
   0xe   : > { %s1103_s17 = sadd.s32 1, %s985_s30   ;;  %s32_s18 = sadd.s32 1, %s981_s29 }
   0xf   : > { %s1363_s13 = scalar_select %p1087_p8, 1, 0 }
  0x10   : > { %p793_p9 = pneg %p1087_p8  ;;  %1365 = sst [smem:[#allocation11_spill]] %s1103_s17 }
  0x11   : > { %s29_s19 = ssub.s32 %s985_s30, %s1103_s17  ;;  %s857_s22 = scalar_lea.hbm %s1347_s1, 1280 }
  0x12   : > { %p1098_p11 = pnand %p793_p9, %p1355_p1  ;;  %p858_p12 = scmp.ne.s32.totalorder %s1347_s1, %s857_s22 }
  0x13   : > { %p864_p5 = scmp.lt.u32.totalorder %s857_s22, %s1347_s1 }
  0x14   : > { %p859_p13 = pneg %p1098_p11 }
  0x16   : > { %p860_p0 = pnand %p859_p13, %p858_p12 }
  0x18   : > { %p861_p3 = pneg %p860_p0 }
  0x1a   : > { %p866_p7 = pnand %p864_p5, %p861_p3 }
  0x1c   : > { %869 = shalt.err (!%p866_p7)
}
  0x1d   : > { %s870_s10 = scalar_lea.vmem %s1091_s15, 1280  ;;  %p878_p2 = scmp.lt.s32.totalorder %s1091_s15, %s1091_s15 }
  0x1e   : > { %p871_p9 = scmp.ne.s32.totalorder %s1091_s15, %s870_s10  ;;  %p879_p6 = scmp.lt.s32.totalorder %s870_s10, %s870_s10 }
  0x20   : > { %p873_p10 = pnand %p871_p9, %p859_p13  ;;  %p880_p4 = por %p879_p6, %p878_p2 }
  0x22   : > { %p874_p1 = pneg %p873_p10 }
  0x24   : > { %p881_p8 = pnand %p880_p4, %p874_p1 }
  0x26   : > { %884 = shalt.err (!%p881_p8)
}
  0x27   : > { %s1360_s14 = smov 256   ;;  %s989_s20 = smov 16  }
  0x28   : > { %796 = dma.hbm_to_vmem [thread:$0]  (!%p1098_p11), %s1347_s1, 1280, %s1091_s15, [#allocation6], %s1360_s14, %s1360_s14, %s989_s20  }
  0x29   : > { %p30_p1 = scmp.eq.s32.totalorder %s29_s19, 0  ;;  %p39_p2 = scmp.ne.s32.totalorder %s981_s29, %s977_s28 }
  0x2a   : > { %p40_p4 = scmp.eq.s32.totalorder %s985_s30, 0  ;;  %p806_p6 = scmp.lt.s32.totalorder %s985_s30, 2 }
  0x2b   : > { %s1137_s23 = scalar_select %p30_p1, %s981_s29, %s32_s18  }
  0x2c   : > { %p41_p8 = por %p40_p4, %p39_p2  ;;  %p1366_p10 = scmp.eq.s32.totalorder %s1068_s9, 1 }
  0x2d   : > { %s273_s16 = sand.u32 1, %s981_s29   ;;  %s783_s25 = sshll.u32 %s985_s30, 9 }
  0x2e   : > { %p1141_p12 = por %p1366_p10, %p39_p2  ;;  %s765_s26 = sshll.u32 %s273_s16, 5 }
  0x2f   : > { %s1150_s21 = scalar_lea.hbm %s1346_s0, %s783_s25  ;;  %s277_s15 = scalar_lea.vmem [#allocation2], %s765_s26 }
  0x30   : > { %s284_s18 = sshll.u32 %s277_s15, 4  ;;  %p1152_p11 = pnand %p806_p6, %p41_p8  ;;  %s1156_s18 = int_to_ptr.vmem [resolvable:$true] %s284_s18 }
  0x31   : > { %s1158_s22 = scalar_lea.sflag [#allocation3], %s273_s16  ;;  %s885_s14 = scalar_lea.hbm %s1150_s21, 512 }
  0x32   : > { %p886_p13 = scmp.ne.s32.totalorder %s1150_s21, %s885_s14  ;;  %p887_p0 = pneg %p1152_p11 }
  0x33   : > { %s890_s26 = scalar_lea.hbm %s1346_s0, 1024  ;;  %p891_p7 = scmp.lt.u32.totalorder %s1150_s21, %s1346_s0 }
  0x34   : > { %p888_p3 = pnand %p887_p0, %p886_p13  ;;  %p892_p9 = scmp.lt.u32.totalorder %s890_s26, %s885_s14 }
  0x35   : > { %p894_p2 = scmp.lt.u32.totalorder %s885_s14, %s1150_s21 }
  0x36   : > { %p889_p5 = pneg %p888_p3  ;;  %p893_p1 = por %p892_p9, %p891_p7 }
  0x38   : > { %p895_p4 = por %p894_p2, %p893_p1 }
  0x3a   : > { %p896_p6 = pnand %p895_p4, %p889_p5 }
  0x3c   : > { %899 = shalt.err (!%p896_p6)
}
  0x3d   : > { %s900_s16 = scalar_lea.vmem %s1156_s18, 512  ;;  %s990_s17 = smov [#allocation2]  }
  0x3e   : > { %p901_p8 = scmp.ne.s32.totalorder %s1156_s18, %s900_s16  ;;  %s905_s25 = sshll.u32 %s990_s17, 4  ;;  %s906_s25 = int_to_ptr.vmem [resolvable:$false] %s905_s25 }
  0x3f   : > { %s907_s10 = scalar_lea.vmem %s906_s25, 1024  ;;  %p908_p3 = scmp.lt.s32.totalorder %s1156_s18, %s906_s25 }
  0x40   : > { %p903_p10 = pnand %p901_p8, %p887_p0  ;;  %p909_p7 = scmp.lt.s32.totalorder %s907_s10, %s900_s16 }
  0x42   : > { %p904_p13 = pneg %p903_p10  ;;  %p910_p9 = por %p909_p7, %p908_p3 }
  0x44   : > { %p911_p1 = pnand %p910_p9, %p904_p13 }
  0x46   : > { %914 = shalt.err (!%p911_p1)
}
  0x47   : > { %s1369_s14 = smov 256   ;;  %p1370_p0 = scmp.ne.s32.totalorder %s1363_s13, 0 }
  0x48   : > { %800 = dma.hbm_to_vmem [thread:$0]  (!%p1152_p11), %s1150_s21, 512, %s1156_s18, %s1158_s22, %s1369_s14, %s1369_s14, %s989_s20  }
  0x49   : > { %296 = sbr.rel (%p1370_p0) target bundleno = 919 (0x397), region = 52  ;;  %s1192_s26 = sand.u32 (!%p1370_p0), 1, %s977_s28  }
  0x4a   : > { %s769_s15 = sshll.u32 (!%p1370_p0), %s1192_s26, 5  ;;  %s299_s16 = scalar_lea.sflag (!%p1370_p0), [#allocation3], %s1192_s26 }
  0x4b   : > { %s302_s19 = scalar_lea.vmem (!%p1370_p0), [#allocation2], %s769_s15  ;;  %p1371_p5 = scmp.ne.s32.totalorder (!%p1370_p0), %s1361_s11, 0 }
  0x50   : > { %960 = dma.done.wait (%p1371_p5), %s299_s16, 512  }
  0x51   : > { %962 = vsyncadd (%p1371_p5), %s299_s16, 4294966784  ;;  %p1372_p11 = scmp.eq.s32.totalorder %s1068_s9, 0 }
  0x53   : > { %964 = dma.done.wait (%p1372_p11), [#allocation6], 1280   ;;  %p1373_p2 = pmov %p1372_p11 }
  0x54   : > { %v991_v0 = vmov 0   ;;  %v1206_v1 = vld [vmem:[%s302_s19 + $0x8] sm:$0xff]  ;;  %v1208_v2 = vld [vmem:[%s302_s19 + $0x18] sm:$0xff]  ;;  %v1210_v3 = vld [vmem:[%s302_s19] sm:$0xff]  ;;  %vm353_vm0 = vcmask 130048   ;;  %s992_s18 = smov 1   ;;  %v404_v23 = vlaneseq }
  0x55   : > { %966 = vsyncadd (%p1373_p2), [#allocation6], 4294966016  ;;  %389 = vmatprep.mubr.bf16.mxu0 %v991_v0  ;;  %854 = vset.pattern.permute.xlu0 %v991_v0  ;;  %v346_v4 = vpack.c.bf16 %v1208_v2, %v1206_v1  ;;  %v1214_v5 = vld [vmem:[%s302_s19 + $0x10] sm:$0xff]  ;;  %v347_v6 = vld [vmem:[%s1349_s3] sm:$0xf]  ;;  %s993_s22 = smov 16  }
  0x56   : > { %567 = vmatprep.mubr.bf16.mxu1 %v991_v0  ;;  %855 = vset.pattern.permute.xlu1 %v991_v0  ;;  %v345_v7 = vpack.c.bf16 %v1214_v5, %v1210_v3  ;;  %v344_v8 = vld [vmem:[%s1348_s2] sm:$0x3]  ;;  %s994_s17 = smov 17   ;;  %s995_s25 = smov 15   ;;  %v583_v20 = vld [vmem:[%s1353_s7 + $0x8] sm:$0xff]  ;;  %v1255_v25 = vand.u32 127, %v404_v23 }
  0x57   : > { %350 = vperm.xlu0 %854, %v347_v6   ;;  %357 = vmatprep.subr.bf16.mxu0 %v346_v4  ;;  %s996_s10 = smov 127   ;;  %s997_s14 = smov 112   ;;  %v582_v18 = vld [vmem:[%s1353_s7] sm:$0xff]  ;;  %vm482_vm3 = vcmask 1043456   ;;  %v494_v41 = vld [vmem:[#allocation5 + $0x18] sm:$0xff]  ;;  %v493_v42 = vld [vmem:[#allocation5 + $0x10] sm:$0xff] }
  0x58   : > { %358 = vmatpush1.bf16.msra.mxu0 %v345_v7  ;;  %s998_s16 = smov 113   ;;  %s999_s19 = smov 111   ;;  %v518_v19 = vld [vmem:[%s1351_s5] sm:$0xf]  ;;  %vm427_vm1 = vcmp.lt.s32.totalorder %v1255_v25, 1  ;;  %vm420_vm2 = vcmp.lt.s32.totalorder %v1255_v25, 15 }
  0x59   : > { %vm413_vm4 = vcmp.lt.s32.totalorder %v1255_v25, 16  ;;  %vm434_vm5 = vcmp.lt.s32.totalorder %v1255_v25, 127  ;;  %vm406_vm6 = vcmp.lt.s32.totalorder %v1255_v25, 17  ;;  %vm448_vm7 = vcmp.lt.s32.totalorder %v1255_v25, 112  ;;  %v492_v49 = vld [vmem:[#allocation5 + $0x8] sm:$0xff]  ;;  %v491_v50 = vld [vmem:[#allocation5] sm:$0xff] }
  0x5a   : > { %vm441_vm8 = vcmp.lt.s32.totalorder %v1255_v25, 113  ;;  %v496_v7 = vld [vmem:[#allocation5 + $0x28] sm:$0xff]  ;;  %vm455_vm9 = vcmp.lt.s32.totalorder %v1255_v25, 111  ;;  %vm528_vm10 = vcmask 1041408   ;;  %vm524_vm11 = vcmask 293888   ;;  %s784_s13 = sshll.u32 %s1068_s9, 9 }
  0x5b   : > { %772 = vmatmul.mubr.msk.bf16.vlgmr.msra.gmra.mrb[0].mxu0 %vm353_vm0, %v344_v8  ;;  %vm599_vm12 = vcmask 31744   ;;  %s1301_s21 = scalar_lea.hbm %s1354_s8, %s784_s13  ;;  %s665_s9 = scalar_lea.sflag [#allocation4], %s1192_s26 }
  0x5c   : > { %641 = vmatprep.mubr.bf16.mxu0 %v991_v0 }
  0xd6   : > { %v351_v9 = vpop.permute.xlu0 %350 }
 0x12e   : > { %v391_v10 = vpop.f32.mrb[0].mxu0 }
 0x12f   : > { %v392_v11 = vadd.f32 %v391_v10, %v351_v9  ;;  %v393_v12 = vpop.f32.mrb[1].mxu0 }
 0x130   : > { %v395_v13 = vpop.f32.mrb[2].mxu0  ;;  %v394_v15 = vadd.f32 %v393_v12, %v351_v9 }
 0x131   : > { %v1224_v14 = vmax.f32 %v392_v11, 0.0  ;;  %v396_v16 = vpop.f32.mrb[3].mxu0  ;;  %v497_v13 = vld [vmem:[#allocation5 + $0x30] sm:$0xff] }
 0x132   : > { %v1229_v17 = vmax.f32 %v394_v15, 0.0  ;;  %v498_v15 = vld [vmem:[#allocation5 + $0x38] sm:$0xff] }
 0x133   : > { %423 = vrot.lane.b32.xlu1 %v1224_v14, %s992_s18  ;;  %409 = vrot.lane.b32.xlu0 %v1224_v14, %s993_s22 }
 0x137   : > { %400 = vrot.lane.b32.xlu1 %v1224_v14, %s994_s17  ;;  %425 = vrot.lane.b32.xlu0 %v1229_v17, %s992_s18 }
 0x13b   : > { %416 = vrot.lane.b32.xlu1 %v1224_v14, %s995_s25  ;;  %402 = vrot.lane.b32.xlu0 %v1229_v17, %s994_s17  ;;  %s1000_s17 = smov [#allocation7]  }
 0x13f   : > { %430 = vrot.lane.b32.xlu1 %v1224_v14, %s996_s10  ;;  %418 = vrot.lane.b32.xlu0 %v1229_v17, %s995_s25  ;;  %s919_s25 = sshll.u32 %s1000_s17, 4  ;;  %s920_s25 = int_to_ptr.vmem [resolvable:$false] %s919_s25 }
 0x143   : > { %411 = vrot.lane.b32.xlu1 %v1229_v17, %s993_s22  ;;  %432 = vrot.lane.b32.xlu0 %v1229_v17, %s996_s10  ;;  %s921_s10 = scalar_lea.vmem %s920_s25, 1024 }
 0x147   : > { %444 = vrot.lane.b32.xlu1 %v1224_v14, %s997_s14  ;;  %446 = vrot.lane.b32.xlu0 %v1229_v17, %s997_s14 }
 0x14b   : > { %437 = vrot.lane.b32.xlu1 %v1224_v14, %s998_s16  ;;  %439 = vrot.lane.b32.xlu0 %v1229_v17, %s998_s16 }
 0x14f   : > { %451 = vrot.lane.b32.xlu1 %v1224_v14, %s999_s19  ;;  %453 = vrot.lane.b32.xlu0 %v1229_v17, %s999_s19  ;;  %s338_s19 = scalar_lea.vmem [#allocation7], %s769_s15 }
 0x150   : > { %s678_s11 = sshll.u32 %s338_s19, 4  ;;  %s1296_s11 = int_to_ptr.vmem [resolvable:$true] %s678_s11 }
 0x151   : > { %s915_s18 = scalar_lea.vmem %s1296_s11, 512  ;;  %p922_p10 = scmp.lt.s32.totalorder %s1296_s11, %s920_s25 }
 0x152   : > { %p916_p4 = scmp.ne.s32.totalorder %s1296_s11, %s915_s18  ;;  %p923_p13 = scmp.lt.s32.totalorder %s921_s10, %s915_s18 }
 0x153   : > { %586 = vperm.xlu0 %854, %v582_v18   ;;  %521 = vperm.xlu1 %855, %v518_v19   ;;  %v495_v18 = vld [vmem:[#allocation5 + $0x20] sm:$0xff] }
 0x154   : > { %p917_p6 = pnand %p916_p4, %p1141_p12  ;;  %p924_p3 = por %p923_p13, %p922_p10 }
 0x156   : > { %p918_p8 = pneg %p917_p6 }
 0x157   : > { %591 = vperm.xlu1 %855, %v583_v20  }
 0x158   : > { %p925_p7 = pnand %p924_p3, %p918_p8 }
 0x1a5   : > { %v424_v21 = vpop.permute.xlu1 %423  ;;  %v410_v22 = vpop.permute.xlu0 %409 }
 0x1a9   : > { %v401_v24 = vpop.permute.xlu1 %400  ;;  %v426_v26 = vpop.permute.xlu0 %425 }
 0x1aa   : > { %v428_v29 = vsel %vm427_vm1, %v424_v21, %v426_v26  ;;  %v429_v30 = vsel %vm427_vm1, %v426_v26, %v424_v21 }
 0x1ab   : > { %v466_v35 = vrot.slane %v429_v30, 4  ;;  %v467_v36 = vrot.slane %v428_v29, 4 }
 0x1ad   : > { %v417_v27 = vpop.permute.xlu1 %416  ;;  %v403_v28 = vpop.permute.xlu0 %402 }
 0x1ae   : > { %v407_v51 = vsel %vm406_vm6, %v401_v24, %v403_v28  ;;  %v408_v52 = vsel %vm406_vm6, %v403_v28, %v401_v24  ;;  %v500_v24 = vld [vmem:[#allocation5 + $0x48] sm:$0xf] }
 0x1b1   : > { %v431_v31 = vpop.permute.xlu1 %430  ;;  %v419_v32 = vpop.permute.xlu0 %418 }
 0x1b2   : > { %v421_v33 = vsel %vm420_vm2, %v417_v27, %v419_v32  ;;  %v422_v34 = vsel %vm420_vm2, %v419_v32, %v417_v27 }
 0x1b3   : > { %v485_v37 = vsel %vm482_vm3, %v422_v34, %v466_v35  ;;  %v486_v40 = vsel %vm482_vm3, %v421_v33, %v467_v36 }
 0x1b4   : > { %v504_v53 = vmul.f32 %v494_v41, %v486_v40  ;;  %v503_v54 = vmul.f32 %v493_v42, %v485_v37 }
 0x1b5   : > { %v412_v38 = vpop.permute.xlu1 %411  ;;  %v433_v39 = vpop.permute.xlu0 %432 }
 0x1b6   : > { %v414_v43 = vsel %vm413_vm4, %v410_v22, %v412_v38  ;;  %v415_v44 = vsel %vm413_vm4, %v412_v38, %v410_v22  ;;  %v435_v45 = vsel %vm434_vm5, %v431_v31, %v433_v39  ;;  %v436_v46 = vsel %vm434_vm5, %v433_v39, %v431_v31  ;;  %v517_v38 = vld [vmem:[%s1350_s4] sm:$0x3] }
 0x1b7   : > { %v460_v47 = vrot.slane %v415_v44, 4  ;;  %v461_v48 = vrot.slane %v414_v43, 4  ;;  %v472_v55 = vrot.slane %v435_v45, 4  ;;  %v473_v56 = vrot.slane %v436_v46, 4 }
 0x1b9   : > { %v445_v57 = vpop.permute.xlu1 %444  ;;  %v447_v58 = vpop.permute.xlu0 %446  ;;  %v484_v59 = vsel %vm482_vm3, %v407_v51, %v461_v48  ;;  %v483_v60 = vsel %vm482_vm3, %v408_v52, %v460_v47  ;;  %v487_v8 = vsel %vm482_vm3, %v1224_v14, %v472_v55  ;;  %v488_v9 = vsel %vm482_vm3, %v1229_v17, %v473_v56  ;;  %v499_v17 = vld [vmem:[#allocation5 + $0x40] sm:$0xf] }
 0x1ba   : > { %v449_v61 = vsel %vm448_vm7, %v445_v57, %v447_v58  ;;  %v450_v62 = vsel %vm448_vm7, %v447_v58, %v445_v57  ;;  %v502_v63 = vmul.f32 %v492_v49, %v484_v59  ;;  %v501_v0 = vmul.f32 %v491_v50, %v483_v60  ;;  %v856_v51 = vld [vmem:[%s1352_s6] sm:$0xff]  }
 0x1bb   : > { %v478_v10 = vrot.slane %v449_v61, 4  ;;  %v479_v11 = vrot.slane %v450_v62, 4  ;;  %v506_v26 = vmul.f32 %v496_v7, %v488_v9  ;;  %v505_v27 = vmul.f32 %v495_v18, %v487_v8 }
 0x1bc   : > { %v512_v4 = vpack.c.bf16 %v504_v53, %v502_v63  ;;  %v511_v6 = vpack.c.bf16 %v503_v54, %v501_v0 }
 0x1bd   : > { %v438_v12 = vpop.permute.xlu1 %437  ;;  %v440_v16 = vpop.permute.xlu0 %439 }
 0x1be   : > { %v442_v19 = vsel %vm441_vm8, %v438_v12, %v440_v16  ;;  %v443_v20 = vsel %vm441_vm8, %v440_v16, %v438_v12  ;;  %535 = vmatprep.subr.bf16.mxu1 %v512_v4 }
 0x1bf   : > { %v489_v21 = vsel %vm482_vm3, %v442_v19, %v478_v10  ;;  %v490_v22 = vsel %vm482_vm3, %v443_v20, %v479_v11  ;;  %536 = vmatpush1.bf16.msra.mxu1 %v511_v6 }
 0x1c0   : > { %v507_v14 = vmul.f32 %v497_v13, %v489_v21  ;;  %v508_v23 = vmul.f32 %v498_v15, %v490_v22 }
 0x1c1   : > { %v452_v28 = vpop.permute.xlu1 %451  ;;  %v454_v29 = vpop.permute.xlu0 %453 }
 0x1c2   : > { %v456_v30 = vsel %vm455_vm9, %v452_v28, %v454_v29  ;;  %v457_v31 = vsel %vm455_vm9, %v454_v29, %v452_v28  ;;  %v514_v32 = vpack.c.bf16 %v508_v23, %v506_v26  ;;  %v513_v33 = vpack.c.bf16 %v507_v14, %v505_v27 }
 0x1c3   : > { %v509_v34 = vmul.f32 %v499_v17, %v456_v30  ;;  %v510_v35 = vmul.f32 %v500_v24, %v457_v31 }
 0x1c4   : > { %537 = vmatprep.subr.bf16.mxu1 %v514_v32 }
 0x1c5   : > { %v515_v36 = vpack.c.bf16 %v509_v34, %v509_v34  ;;  %v516_v37 = vpack.c.bf16 %v510_v35, %v510_v35  ;;  %538 = vmatpush1.bf16.msra.mxu1 %v513_v33 }
 0x1c7   : > { %773 = vmatprep.subr.msk.bf16.mxu1 %vm528_vm10, %v516_v37  ;;  %v530_v25 = vsel %vm528_vm10, %v515_v36, 0 }
 0x1c9   : > { %540 = vmatpush1.bf16.msra.mxu1 %v530_v25 }
 0x1cc   : > { %774 = vmatmul.mubr.msk.bf16.vlgmr.msra.gmra.mrb[0].mxu1 %vm524_vm11, %v517_v38 }
 0x1d2   : > { %v522_v39 = vpop.permute.xlu1 %521  ;;  %v587_v52 = vpop.permute.xlu0 %586 }
 0x1d6   : > { %v592_v56 = vpop.permute.xlu1 %591 }
 0x29f   : > { %v569_v40 = vpop.f32.mrb[0].mxu1 }
 0x2a0   : > { %v570_v41 = vadd.f32 %v569_v40, %v522_v39  ;;  %v571_v42 = vpop.f32.mrb[1].mxu1 }
 0x2a1   : > { %v572_v43 = vadd.f32 %v571_v42, %v522_v39  ;;  %v573_v44 = vpop.f32.mrb[2].mxu1 }
 0x2a2   : > { %v576_v45 = vmax.f32 %v570_v41, 0.0  ;;  %v574_v46 = vpop.f32.mrb[3].mxu1 }
 0x2a3   : > { %v577_v47 = vmax.f32 %v572_v43, 0.0 }
 0x2a4   : > { %v580_v48 = vpack.c.bf16 %v576_v45, %v576_v45 }
 0x2a5   : > { %v581_v49 = vpack.c.bf16 %v577_v47, %v577_v47 }
 0x2a6   : > { %v604_v50 = vsel %vm528_vm10, %v580_v48, 0 }
 0x2a7   : > { %776 = vmatprep.subr.msk.bf16.mxu0 %vm528_vm10, %v581_v49 }
 0x2a8   : > { %610 = vmatpush1.bf16.msra.mxu0 %v604_v50 }
 0x2ab   : > { %777 = vmatmul.mubr.msk.bf16.vlgmr.msra.gmra.mrb[4].mxu0 %vm599_vm12, %v856_v51 }
 0x37e   : > { %v643_v53 = vpop.f32.mrb[4].mxu0 }
 0x37f   : > { %v644_v54 = vadd.f32 %v643_v53, %v587_v52  ;;  %v645_v55 = vpop.f32.mrb[5].mxu0 }
 0x380   : > { %v646_v57 = vadd.f32 %v645_v55, %v587_v52  ;;  %v647_v58 = vpop.f32.mrb[6].mxu0 }
 0x381   : > { %v652_v59 = vadd.f32 %v644_v54, %v1210_v3  ;;  %v648_v60 = vadd.f32 %v647_v58, %v592_v56  ;;  %v649_v61 = vpop.f32.mrb[7].mxu0 }
 0x382   : > { %v653_v62 = vadd.f32 %v646_v57, %v1206_v1  ;;  %v650_v63 = vadd.f32 %v649_v61, %v592_v56 }
 0x383   : > { %v656_v0 = vmax.f32 %v652_v59, 0.0  ;;  %v654_v4 = vadd.f32 %v648_v60, %v1214_v5 }
 0x384   : > { %v657_v6 = vmax.f32 %v653_v62, 0.0  ;;  %v655_v7 = vadd.f32 %v650_v63, %v1208_v2 }
 0x385   : > { %660 = vst [vmem:[%s338_s19] sm:$0xff] %v656_v0  ;;  %v658_v3 = vmax.f32 %v654_v4, 0.0 }
 0x386   : > { %661 = vst [vmem:[%s338_s19 + $0x8] sm:$0xff] %v657_v6  ;;  %v659_v8 = vmax.f32 %v655_v7, 0.0 }
 0x387   : > { %662 = vst [vmem:[%s338_s19 + $0x10] sm:$0xff] %v658_v3 }
 0x388   : > { %663 = vst [vmem:[%s338_s19 + $0x18] sm:$0xff] %v659_v8 }
 0x389   : > { %928 = shalt.err (!%p925_p7)
}
 0x38a   : > { %s929_s14 = scalar_lea.hbm %s1301_s21, 512  ;;  %s933_s13 = scalar_lea.hbm %s1354_s8, 1024 }
 0x38b   : > { %p930_p9 = scmp.ne.s32.totalorder %s1301_s21, %s929_s14  ;;  %p934_p5 = scmp.lt.u32.totalorder %s1301_s21, %s1354_s8 }
 0x38c   : > { %p935_p11 = scmp.lt.u32.totalorder %s933_s13, %s929_s14  ;;  %p937_p4 = scmp.lt.u32.totalorder %s929_s14, %s1301_s21 }
 0x38d   : > { %p931_p1 = pnand %p930_p9, %p1141_p12 }
 0x38e   : > { %p936_p2 = por %p935_p11, %p934_p5 }
 0x38f   : > { %p932_p0 = pneg %p931_p1 }
 0x390   : > { %p938_p6 = por %p937_p4, %p936_p2 }
 0x392   : > { %p939_p8 = pnand %p938_p6, %p932_p0 }
 0x394   : > { %942 = shalt.err (!%p939_p8)
}
 0x395   : > { %s1001_s18 = smov 256  }
 0x396   : > { %791 = dma.vmem_to_hbm [thread:$0]  (%p1141_p12), %s1296_s11, 512, %s1301_s21, %s665_s9, %s1001_s18, %s1001_s18, %s993_s22  }
 0x397 PF: > { %s693_s17 = sand.u32 1, %s973_s27   ;;  %p1374_p10 = scmp.ne.s32.totalorder %s1362_s12, 0 }
 0x398   : > { %p1375_p13 = scmp.ge.s32.totalorder %s985_s30, 2  ;;  %s694_s25 = scalar_lea.sflag [#allocation4], %s693_s17 }
 0x39a   : > { %p802_p3 = pnand %p1375_p13, %p1374_p10 }
 0x39c   : > { %968 = dma.done.wait (!%p802_p3), %s694_s25, 512  }
 0x39d   : > { %970 = vsyncadd (!%p802_p3), %s694_s25, 4294966784  ;;  %s1376_s30 = sld [smem:[#allocation11_spill]]  ;;  %s1377_s27 = smov %s977_s28 }
 0x39e   : > { %s1378_s28 = smov %s981_s29  ;;  %s1379_s29 = smov %s1137_s23 }
 0x3a3   : > { %p22_p7 = scmp.ge.s32.totalorder %s1376_s30, 4  }
 0x3a5   :  { %24 = sbr.rel (!%p22_p7) target bundleno = 6 (0x6), region = 101 }
 0x3ac   :  { %699 = vsyncpa [#allocation3], 1 }
 0x3ad   :  { %701 = vsyncpa [#allocation3 + $0x1], 1 }
 0x3ae   :  { %702 = vsyncpa [#allocation6], 1 }
 0x3af   :  { %703 = vsyncpa [#allocation4], 1 }
 0x3b0   :  { %705 = vsyncpa [#allocation4 + $0x1], 1 }

</bundles_post_ra>
